<compile_context>
chip_gen: v7x
topology: tpu7x:2x2x1
jax: 0.10.0
libtpu: 0.0.40
codegen_flags: <defaults>
</compile_context>

<pallas_src>
import functools
import math

import jax
import jax.numpy as jnp
from jax.experimental import pallas as pl
from jax.experimental.pallas import tpu as pltpu


# ------------------------------- kernel ------------------------------------

def _predict_net1_kernel(
    x_ref,    # (TB, N)  input tile
    w1_ref,   # (N, H)
    b1_ref,   # (1, H)
    cen_ref,  # (1, H)   LayerNorm center parameter
    w2_ref,   # (H, H)
    b2_ref,   # (1, H)
    w3_ref,   # (H, O)   last_fc weight
    b3_ref,   # (1, O)   last_fc bias
    out_ref,  # (TB, O)
    *,
    layer_norm: bool,
    ln_eps: float,
    compute_dtype,
):
    def dot(a, w_ref):
        return jnp.dot(
            a.astype(compute_dtype),
            w_ref[...].astype(compute_dtype),
            preferred_element_type=jnp.float32,
        )

    x = x_ref[...]

    # linear1
    h = dot(x, w1_ref) + b1_ref[...]

    # LayerNorm (center=True, scale=False). torch.Tensor.std is the
    # *unbiased* estimator (divides by H-1) and eps is added to std.
    if layer_norm:
        H = h.shape[-1]
        mu = jnp.mean(h, axis=-1, keepdims=True)
        d = h - mu
        var = jnp.sum(d * d, axis=-1, keepdims=True) * (1.0 / (H - 1))
        # one reciprocal per row, then a broadcast multiply (cheaper than a
        # full-tile divide; approx=True would move it to the EUP slot).
        inv = pl.reciprocal(jnp.sqrt(var) + ln_eps, approx=False)
        h = d * inv + cen_ref[...]

    h = jnp.maximum(h, 0.0)

    # linear2 + relu
    h = jnp.maximum(dot(h, w2_ref) + b2_ref[...], 0.0)

    # last_fc — single lane-dense store of the whole output tile.
    out_ref[...] = (dot(h, w3_ref) + b3_ref[...]).astype(out_ref.dtype)


# ------------------------------- wrapper ------------------------------------

def _choose_tile_b(B):
    """Largest power-of-two row tile (multiple of 8) that divides B and leaves
    at least 2 grid steps (so v7x megacore / pipelining have work)."""
    for c in (512, 256, 128, 64, 32, 16, 8):
        if B % c == 0 and B // c >= 2:
            return c
    return B


def predict_network1_forward(x, params, *, tile_b=None, layer_norm=True,
                             ln_eps=1e-6, compute_dtype=jnp.float32):
    """Predict_Network1.forward as a single fused Pallas kernel.

    x: (..., num_inputs)  ->  returns (..., num_outputs)
    """
    orig_shape = x.shape
    N = orig_shape[-1]
    x2d = x.reshape(-1, N)
    B = x2d.shape[0]
    H = params["w1"].shape[1]
    O = params["w3"].shape[1]

    TB = _choose_tile_b(B) if tile_b is None else tile_b
    assert B % TB == 0, (B, TB)
    grid = (B // TB,)

    kernel = functools.partial(
        _predict_net1_kernel,
        layer_norm=layer_norm,
        ln_eps=ln_eps,
        compute_dtype=compute_dtype,
    )

    args = (
        x2d,
        params["w1"], params["b1"], params["ln1_center"],
        params["w2"], params["b2"],
        params["w3"], params["b3"],
    )

    def run(weight_pipeline_mode):
        def wspec(shape):
            # grid-invariant weights / biases: constant block index.
            return pl.BlockSpec(shape, lambda i: (0,) * len(shape),
                                pipeline_mode=weight_pipeline_mode)

        in_specs = [
            pl.BlockSpec((TB, N), lambda i: (i, 0)),   # x (batch-tiled)
            wspec((N, H)),                             # w1
            wspec((1, H)),                             # b1
            wspec((1, H)),                             # ln1 center
            wspec((H, H)),                             # w2
            wspec((1, H)),                             # b2
            wspec((H, O)),                             # w3
            wspec((1, O)),                             # b3
        ]
        out_specs = pl.BlockSpec((TB, O), lambda i: (i, 0))

        return pl.pallas_call(
            kernel,
            out_shape=jax.ShapeDtypeStruct((B, O), jnp.float32),
            grid_spec=pltpu.PrefetchScalarGridSpec(
                num_scalar_prefetch=0,
                grid=grid,
                in_specs=in_specs,
                out_specs=out_specs,
            ),
            compiler_params=pltpu.CompilerParams(
                dimension_semantics=("parallel",),
            ),
        )(*args)

    try:
        # Weights never change across grid steps -> single-buffer them to save
        # VMEM (matters for large H on v7x's 64 MiB VMEM).
        out2d = run(pl.Buffered(buffer_count=1))
    except Exception:
        # Fallback for jax versions where Buffered(1) isn't accepted here.
        out2d = run(None)

    return out2d.reshape(*orig_shape[:-1], O)


# ------------------------- parameter construction ---------------------------

def _xavier_uniform(key, fan_in, fan_out, gain=1.0):
    bound = gain * math.sqrt(6.0 / (fan_in + fan_out))
    # stored as (in, out) so the kernel does x @ W
    return jax.random.uniform(
        key, (fan_in, fan_out), dtype=jnp.float32, minval=-bound, maxval=bound
    )


def init_params(key, num_inputs, hidden_dim, num_outputs):
    k1, k2, k3 = jax.random.split(key, 3)
    return {
        "w1": _xavier_uniform(k1, num_inputs, hidden_dim),
        "b1": jnp.zeros((1, hidden_dim), jnp.float32),
        "ln1_center": jnp.zeros((1, hidden_dim), jnp.float32),
        "w2": _xavier_uniform(k2, hidden_dim, hidden_dim),
        "b2": jnp.zeros((1, hidden_dim), jnp.float32),
        "w3": _xavier_uniform(k3, hidden_dim, num_outputs),
        "b3": jnp.zeros((1, num_outputs), jnp.float32),
    }


# ------------------------------ reference -----------------------------------

def reference_forward(x, params, layer_norm=True, ln_eps=1e-6):
    h = x @ params["w1"] + params["b1"]
    if layer_norm:
        H = h.shape[-1]
        mu = jnp.mean(h, axis=-1, keepdims=True)
        d = h - mu
        std = jnp.sqrt(jnp.sum(d * d, axis=-1, keepdims=True) / (H - 1))
        h = d / (std + ln_eps) + params["ln1_center"]
    h = jax.nn.relu(h)
    h = jax.nn.relu(h @ params["w2"] + params["b2"])
    return h @ params["w3"] + params["b3"]


# TODO(synk): get_log_pi / update (Adam optimizer, grad clipping) are training
# utilities, not part of the forward pass, and are not implemented as kernels.

if __name__ == "__main__":
    num_inputs = 16
    hidden_dim = 32
    num_outputs = 16
    batch = 64   # -> auto tile_b=32, grid=(2,): 2 parallel steps (v7x megacore)

    key = jax.random.PRNGKey(0)
    k_in, k_param = jax.random.split(key)
    x = jax.random.normal(k_in, (batch, num_inputs), dtype=jnp.float32)
    params = init_params(k_param, num_inputs, hidden_dim, num_outputs)

    out = predict_network1_forward(x, params)
    jax.block_until_ready(out)

    ref = reference_forward(x, params)
    assert out.shape == (batch, num_outputs)
    assert jnp.allclose(out, ref, atol=1e-5, rtol=1e-5), float(
        jnp.max(jnp.abs(out - ref)))

    print("KERNEL_OK")
</pallas_src>

<mosaic_0001>
module attributes {stable_mosaic.version = 11 : i64} {
  func.func @_predict_net1_kernel(%arg0: i32, %arg1: memref<32x16xf32, #tpu.memory_space<vmem>>, %arg2: memref<16x32xf32, #tpu.memory_space<vmem>>, %arg3: memref<1x32xf32, #tpu.memory_space<vmem>>, %arg4: memref<1x32xf32, #tpu.memory_space<vmem>>, %arg5: memref<32x32xf32, #tpu.memory_space<vmem>>, %arg6: memref<1x32xf32, #tpu.memory_space<vmem>>, %arg7: memref<32x16xf32, #tpu.memory_space<vmem>>, %arg8: memref<1x16xf32, #tpu.memory_space<vmem>>, %arg9: memref<32x16xf32, #tpu.memory_space<vmem>>) attributes {dimension_semantics = [#tpu.dimension_semantics<parallel>], iteration_bounds = array<i64: 2>, scalar_prefetch = 0 : i64, scratch_operands = 0 : i64, tpu.core_type = #tpu.core_type<tc>, window_params = [{transform_indices = @transform_0, window_bounds = array<i64: 32, 16>}, {pipeline_mode = #tpu.pipeline_mode<synchronous>, transform_indices = @transform_1, window_bounds = array<i64: 16, 32>}, {pipeline_mode = #tpu.pipeline_mode<synchronous>, transform_indices = @transform_2, window_bounds = array<i64: 1, 32>}, {pipeline_mode = #tpu.pipeline_mode<synchronous>, transform_indices = @transform_3, window_bounds = array<i64: 1, 32>}, {pipeline_mode = #tpu.pipeline_mode<synchronous>, transform_indices = @transform_4, window_bounds = array<i64: 32, 32>}, {pipeline_mode = #tpu.pipeline_mode<synchronous>, transform_indices = @transform_5, window_bounds = array<i64: 1, 32>}, {pipeline_mode = #tpu.pipeline_mode<synchronous>, transform_indices = @transform_6, window_bounds = array<i64: 32, 16>}, {pipeline_mode = #tpu.pipeline_mode<synchronous>, transform_indices = @transform_7, window_bounds = array<i64: 1, 16>}, {transform_indices = @transform_8, window_bounds = array<i64: 32, 16>}]} {
    %c0 = arith.constant 0 : index
    %c0_0 = arith.constant 0 : index
    %0 = vector.load %arg1[%c0, %c0_0] : memref<32x16xf32, #tpu.memory_space<vmem>>, vector<32x16xf32>
    %c0_1 = arith.constant 0 : index
    %c0_2 = arith.constant 0 : index
    %1 = vector.load %arg2[%c0_1, %c0_2] : memref<16x32xf32, #tpu.memory_space<vmem>>, vector<16x32xf32>
    %cst = arith.constant dense<0.000000e+00> : vector<32x32xf32>
    %2 = tpu.matmul %0, %1, %cst {dimension_numbers = #tpu.dot_dimension_numbers<[1], [0], [0], [1], [0, 0, 1, 1], [], []>} : vector<32x16xf32>, vector<16x32xf32>, vector<32x32xf32> -> vector<32x32xf32>
    %c0_3 = arith.constant 0 : index
    %c0_4 = arith.constant 0 : index
    %3 = vector.load %arg3[%c0_3, %c0_4] : memref<1x32xf32, #tpu.memory_space<vmem>>, vector<1x32xf32>
    %4 = vector.broadcast %3 : vector<1x32xf32> to vector<32x32xf32>
    %5 = arith.addf %2, %4 : vector<32x32xf32>
    %cst_5 = arith.constant dense<0.000000e+00> : vector<32xf32>
    %6 = vector.multi_reduction <add>, %5, %cst_5 [1] : vector<32x32xf32> to vector<32xf32>
    %7 = vector.shape_cast %6 : vector<32xf32> to vector<32x1xf32>
    %cst_6 = arith.constant 3.200000e+01 : f32
    %8 = vector.broadcast %cst_6 : f32 to vector<32x1xf32>
    %9 = arith.divf %7, %8 : vector<32x1xf32>
    %10 = vector.broadcast %9 : vector<32x1xf32> to vector<32x32xf32>
    %11 = arith.subf %5, %10 : vector<32x32xf32>
    %12 = arith.mulf %11, %11 : vector<32x32xf32>
    %cst_7 = arith.constant dense<0.000000e+00> : vector<32xf32>
    %13 = vector.multi_reduction <add>, %12, %cst_7 [1] : vector<32x32xf32> to vector<32xf32>
    %14 = vector.shape_cast %13 : vector<32xf32> to vector<32x1xf32>
    %cst_8 = arith.constant 0.0322580636 : f32
    %15 = vector.broadcast %cst_8 : f32 to vector<32x1xf32>
    %16 = arith.mulf %14, %15 : vector<32x1xf32>
    %17 = math.sqrt %16 : vector<32x1xf32>
    %cst_9 = arith.constant 9.99999997E-7 : f32
    %18 = vector.broadcast %cst_9 : f32 to vector<32x1xf32>
    %19 = arith.addf %17, %18 : vector<32x1xf32>
    %20 = tpu.reciprocal %19 : vector<32x1xf32> -> vector<32x1xf32>
    %21 = vector.broadcast %20 : vector<32x1xf32> to vector<32x32xf32>
    %22 = arith.mulf %11, %21 : vector<32x32xf32>
    %c0_10 = arith.constant 0 : index
    %c0_11 = arith.constant 0 : index
    %23 = vector.load %arg4[%c0_10, %c0_11] : memref<1x32xf32, #tpu.memory_space<vmem>>, vector<1x32xf32>
    %24 = vector.broadcast %23 : vector<1x32xf32> to vector<32x32xf32>
    %25 = arith.addf %22, %24 : vector<32x32xf32>
    %cst_12 = arith.constant 0.000000e+00 : f32
    %26 = vector.broadcast %cst_12 : f32 to vector<32x32xf32>
    %27 = arith.maximumf %25, %26 : vector<32x32xf32>
    %c0_13 = arith.constant 0 : index
    %c0_14 = arith.constant 0 : index
    %28 = vector.load %arg5[%c0_13, %c0_14] : memref<32x32xf32, #tpu.memory_space<vmem>>, vector<32x32xf32>
    %cst_15 = arith.constant dense<0.000000e+00> : vector<32x32xf32>
    %29 = tpu.matmul %27, %28, %cst_15 {dimension_numbers = #tpu.dot_dimension_numbers<[1], [0], [0], [1], [0, 0, 1, 1], [], []>} : vector<32x32xf32>, vector<32x32xf32>, vector<32x32xf32> -> vector<32x32xf32>
    %c0_16 = arith.constant 0 : index
    %c0_17 = arith.constant 0 : index
    %30 = vector.load %arg6[%c0_16, %c0_17] : memref<1x32xf32, #tpu.memory_space<vmem>>, vector<1x32xf32>
    %31 = vector.broadcast %30 : vector<1x32xf32> to vector<32x32xf32>
    %32 = arith.addf %29, %31 : vector<32x32xf32>
    %cst_18 = arith.constant 0.000000e+00 : f32
    %33 = vector.broadcast %cst_18 : f32 to vector<32x32xf32>
    %34 = arith.maximumf %32, %33 : vector<32x32xf32>
    %c0_19 = arith.constant 0 : index
    %c0_20 = arith.constant 0 : index
    %35 = vector.load %arg7[%c0_19, %c0_20] : memref<32x16xf32, #tpu.memory_space<vmem>>, vector<32x16xf32>
    %cst_21 = arith.constant dense<0.000000e+00> : vector<32x16xf32>
    %36 = tpu.matmul %34, %35, %cst_21 {dimension_numbers = #tpu.dot_dimension_numbers<[1], [0], [0], [1], [0, 0, 1, 1], [], []>} : vector<32x32xf32>, vector<32x16xf32>, vector<32x16xf32> -> vector<32x16xf32>
    %c0_22 = arith.constant 0 : index
    %c0_23 = arith.constant 0 : index
    %37 = vector.load %arg8[%c0_22, %c0_23] : memref<1x16xf32, #tpu.memory_space<vmem>>, vector<1x16xf32>
    %38 = vector.broadcast %37 : vector<1x16xf32> to vector<32x16xf32>
    %39 = arith.addf %36, %38 : vector<32x16xf32>
    %c0_24 = arith.constant 0 : index
    %c0_25 = arith.constant 0 : index
    %40 = vector.load %arg9[%c0_24, %c0_25] : memref<32x16xf32, #tpu.memory_space<vmem>>, vector<32x16xf32>
    tpu.vector_store %arg9[%c0_24, %c0_25], %39 {strides = array<i32>} : memref<32x16xf32, #tpu.memory_space<vmem>>, vector<32x16xf32>,
    return
  }
  func.func @transform_0(%arg0: i32) -> (i32, i32) {
    %c0_i32 = arith.constant 0 : i32
    %c0_i32_0 = arith.constant 0 : i32
    return %arg0, %c0_i32 : i32, i32
  }
  func.func @transform_1(%arg0: i32) -> (i32, i32) {
    %c0_i32 = arith.constant 0 : i32
    %c0_i32_0 = arith.constant 0 : i32
    %c0_i32_1 = arith.constant 0 : i32
    return %c0_i32, %c0_i32_0 : i32, i32
  }
  func.func @transform_2(%arg0: i32) -> (i32, i32) {
    %c0_i32 = arith.constant 0 : i32
    %c0_i32_0 = arith.constant 0 : i32
    %c0_i32_1 = arith.constant 0 : i32
    return %c0_i32, %c0_i32_0 : i32, i32
  }
  func.func @transform_3(%arg0: i32) -> (i32, i32) {
    %c0_i32 = arith.constant 0 : i32
    %c0_i32_0 = arith.constant 0 : i32
    %c0_i32_1 = arith.constant 0 : i32
    return %c0_i32, %c0_i32_0 : i32, i32
  }
  func.func @transform_4(%arg0: i32) -> (i32, i32) {
    %c0_i32 = arith.constant 0 : i32
    %c0_i32_0 = arith.constant 0 : i32
    %c0_i32_1 = arith.constant 0 : i32
    return %c0_i32, %c0_i32_0 : i32, i32
  }
  func.func @transform_5(%arg0: i32) -> (i32, i32) {
    %c0_i32 = arith.constant 0 : i32
    %c0_i32_0 = arith.constant 0 : i32
    %c0_i32_1 = arith.constant 0 : i32
    return %c0_i32, %c0_i32_0 : i32, i32
  }
  func.func @transform_6(%arg0: i32) -> (i32, i32) {
    %c0_i32 = arith.constant 0 : i32
    %c0_i32_0 = arith.constant 0 : i32
    %c0_i32_1 = arith.constant 0 : i32
    return %c0_i32, %c0_i32_0 : i32, i32
  }
  func.func @transform_7(%arg0: i32) -> (i32, i32) {
    %c0_i32 = arith.constant 0 : i32
    %c0_i32_0 = arith.constant 0 : i32
    %c0_i32_1 = arith.constant 0 : i32
    return %c0_i32, %c0_i32_0 : i32, i32
  }
  func.func @transform_8(%arg0: i32) -> (i32, i32) {
    %c0_i32 = arith.constant 0 : i32
    %c0_i32_0 = arith.constant 0 : i32
    return %arg0, %c0_i32 : i32, i32
  }
}

module attributes {stable_mosaic.version = 11 : i64} {
  func.func @_predict_net1_kernel(%arg0: i32, %arg1: memref<32x16xf32, #tpu.memory_space<vmem>>, %arg2: memref<16x32xf32, #tpu.memory_space<vmem>>, %arg3: memref<1x32xf32, #tpu.memory_space<vmem>>, %arg4: memref<1x32xf32, #tpu.memory_space<vmem>>, %arg5: memref<32x32xf32, #tpu.memory_space<vmem>>, %arg6: memref<1x32xf32, #tpu.memory_space<vmem>>, %arg7: memref<32x16xf32, #tpu.memory_space<vmem>>, %arg8: memref<1x16xf32, #tpu.memory_space<vmem>>, %arg9: memref<32x16xf32, #tpu.memory_space<vmem>>) attributes {dimension_semantics = [#tpu.dimension_semantics<parallel>], iteration_bounds = array<i64: 2>, scalar_prefetch = 0 : i64, scratch_operands = 0 : i64, tpu.core_type = #tpu.core_type<tc>, window_params = [{transform_indices = @transform_0, window_bounds = array<i64: 32, 16>}, {pipeline_mode = #tpu.pipeline_mode<synchronous>, transform_indices = @transform_1, window_bounds = array<i64: 16, 32>}, {pipeline_mode = #tpu.pipeline_mode<synchronous>, transform_indices = @transform_2, window_bounds = array<i64: 1, 32>}, {pipeline_mode = #tpu.pipeline_mode<synchronous>, transform_indices = @transform_3, window_bounds = array<i64: 1, 32>}, {pipeline_mode = #tpu.pipeline_mode<synchronous>, transform_indices = @transform_4, window_bounds = array<i64: 32, 32>}, {pipeline_mode = #tpu.pipeline_mode<synchronous>, transform_indices = @transform_5, window_bounds = array<i64: 1, 32>}, {pipeline_mode = #tpu.pipeline_mode<synchronous>, transform_indices = @transform_6, window_bounds = array<i64: 32, 16>}, {pipeline_mode = #tpu.pipeline_mode<synchronous>, transform_indices = @transform_7, window_bounds = array<i64: 1, 16>}, {transform_indices = @transform_8, window_bounds = array<i64: 32, 16>}]} {
    %c0 = arith.constant 0 : index
    %c0_0 = arith.constant 0 : index
    %0 = vector.load %arg1[%c0, %c0_0] : memref<32x16xf32, #tpu.memory_space<vmem>>, vector<32x16xf32>
    %c0_1 = arith.constant 0 : index
    %c0_2 = arith.constant 0 : index
    %1 = vector.load %arg2[%c0_1, %c0_2] : memref<16x32xf32, #tpu.memory_space<vmem>>, vector<16x32xf32>
    %cst = arith.constant dense<0.000000e+00> : vector<32x32xf32>
    %2 = tpu.matmul %0, %1, %cst {dimension_numbers = #tpu.dot_dimension_numbers<[1], [0], [0], [1], [0, 0, 1, 1], [], []>} : vector<32x16xf32>, vector<16x32xf32>, vector<32x32xf32> -> vector<32x32xf32>
    %c0_3 = arith.constant 0 : index
    %c0_4 = arith.constant 0 : index
    %3 = vector.load %arg3[%c0_3, %c0_4] : memref<1x32xf32, #tpu.memory_space<vmem>>, vector<1x32xf32>
    %4 = vector.broadcast %3 : vector<1x32xf32> to vector<32x32xf32>
    %5 = arith.addf %2, %4 : vector<32x32xf32>
    %cst_5 = arith.constant dense<0.000000e+00> : vector<32xf32>
    %6 = vector.multi_reduction <add>, %5, %cst_5 [1] : vector<32x32xf32> to vector<32xf32>
    %7 = vector.shape_cast %6 : vector<32xf32> to vector<32x1xf32>
    %cst_6 = arith.constant 3.200000e+01 : f32
    %8 = vector.broadcast %cst_6 : f32 to vector<32x1xf32>
    %9 = arith.divf %7, %8 : vector<32x1xf32>
    %10 = vector.broadcast %9 : vector<32x1xf32> to vector<32x32xf32>
    %11 = arith.subf %5, %10 : vector<32x32xf32>
    %12 = arith.mulf %11, %11 : vector<32x32xf32>
    %cst_7 = arith.constant dense<0.000000e+00> : vector<32xf32>
    %13 = vector.multi_reduction <add>, %12, %cst_7 [1] : vector<32x32xf32> to vector<32xf32>
    %14 = vector.shape_cast %13 : vector<32xf32> to vector<32x1xf32>
    %cst_8 = arith.constant 0.0322580636 : f32
    %15 = vector.broadcast %cst_8 : f32 to vector<32x1xf32>
    %16 = arith.mulf %14, %15 : vector<32x1xf32>
    %17 = math.sqrt %16 : vector<32x1xf32>
    %cst_9 = arith.constant 9.99999997E-7 : f32
    %18 = vector.broadcast %cst_9 : f32 to vector<32x1xf32>
    %19 = arith.addf %17, %18 : vector<32x1xf32>
    %20 = tpu.reciprocal %19 : vector<32x1xf32> -> vector<32x1xf32>
    %21 = vector.broadcast %20 : vector<32x1xf32> to vector<32x32xf32>
    %22 = arith.mulf %11, %21 : vector<32x32xf32>
    %c0_10 = arith.constant 0 : index
    %c0_11 = arith.constant 0 : index
    %23 = vector.load %arg4[%c0_10, %c0_11] : memref<1x32xf32, #tpu.memory_space<vmem>>, vector<1x32xf32>
    %24 = vector.broadcast %23 : vector<1x32xf32> to vector<32x32xf32>
    %25 = arith.addf %22, %24 : vector<32x32xf32>
    %cst_12 = arith.constant 0.000000e+00 : f32
    %26 = vector.broadcast %cst_12 : f32 to vector<32x32xf32>
    %27 = arith.maximumf %25, %26 : vector<32x32xf32>
    %c0_13 = arith.constant 0 : index
    %c0_14 = arith.constant 0 : index
    %28 = vector.load %arg5[%c0_13, %c0_14] : memref<32x32xf32, #tpu.memory_space<vmem>>, vector<32x32xf32>
    %cst_15 = arith.constant dense<0.000000e+00> : vector<32x32xf32>
    %29 = tpu.matmul %27, %28, %cst_15 {dimension_numbers = #tpu.dot_dimension_numbers<[1], [0], [0], [1], [0, 0, 1, 1], [], []>} : vector<32x32xf32>, vector<32x32xf32>, vector<32x32xf32> -> vector<32x32xf32>
    %c0_16 = arith.constant 0 : index
    %c0_17 = arith.constant 0 : index
    %30 = vector.load %arg6[%c0_16, %c0_17] : memref<1x32xf32, #tpu.memory_space<vmem>>, vector<1x32xf32>
    %31 = vector.broadcast %30 : vector<1x32xf32> to vector<32x32xf32>
    %32 = arith.addf %29, %31 : vector<32x32xf32>
    %cst_18 = arith.constant 0.000000e+00 : f32
    %33 = vector.broadcast %cst_18 : f32 to vector<32x32xf32>
    %34 = arith.maximumf %32, %33 : vector<32x32xf32>
    %c0_19 = arith.constant 0 : index
    %c0_20 = arith.constant 0 : index
    %35 = vector.load %arg7[%c0_19, %c0_20] : memref<32x16xf32, #tpu.memory_space<vmem>>, vector<32x16xf32>
    %cst_21 = arith.constant dense<0.000000e+00> : vector<32x16xf32>
    %36 = tpu.matmul %34, %35, %cst_21 {dimension_numbers = #tpu.dot_dimension_numbers<[1], [0], [0], [1], [0, 0, 1, 1], [], []>} : vector<32x32xf32>, vector<32x16xf32>, vector<32x16xf32> -> vector<32x16xf32>
    %c0_22 = arith.constant 0 : index
    %c0_23 = arith.constant 0 : index
    %37 = vector.load %arg8[%c0_22, %c0_23] : memref<1x16xf32, #tpu.memory_space<vmem>>, vector<1x16xf32>
    %38 = vector.broadcast %37 : vector<1x16xf32> to vector<32x16xf32>
    %39 = arith.addf %36, %38 : vector<32x16xf32>
    %c0_24 = arith.constant 0 : index
    %c0_25 = arith.constant 0 : index
    %40 = vector.load %arg9[%c0_24, %c0_25] : memref<32x16xf32, #tpu.memory_space<vmem>>, vector<32x16xf32>
    tpu.vector_store %arg9[%c0_24, %c0_25], %39 {strides = array<i32>} : memref<32x16xf32, #tpu.memory_space<vmem>>, vector<32x16xf32>,
    return
  }
  func.func @transform_0(%arg0: i32) -> (i32, i32) {
    %c0_i32 = arith.constant 0 : i32
    %c0_i32_0 = arith.constant 0 : i32
    return %arg0, %c0_i32 : i32, i32
  }
  func.func @transform_1(%arg0: i32) -> (i32, i32) {
    %c0_i32 = arith.constant 0 : i32
    %c0_i32_0 = arith.constant 0 : i32
    %c0_i32_1 = arith.constant 0 : i32
    return %c0_i32, %c0_i32_0 : i32, i32
  }
  func.func @transform_2(%arg0: i32) -> (i32, i32) {
    %c0_i32 = arith.constant 0 : i32
    %c0_i32_0 = arith.constant 0 : i32
    %c0_i32_1 = arith.constant 0 : i32
    return %c0_i32, %c0_i32_0 : i32, i32
  }
  func.func @transform_3(%arg0: i32) -> (i32, i32) {
    %c0_i32 = arith.constant 0 : i32
    %c0_i32_0 = arith.constant 0 : i32
    %c0_i32_1 = arith.constant 0 : i32
    return %c0_i32, %c0_i32_0 : i32, i32
  }
  func.func @transform_4(%arg0: i32) -> (i32, i32) {
    %c0_i32 = arith.constant 0 : i32
    %c0_i32_0 = arith.constant 0 : i32
    %c0_i32_1 = arith.constant 0 : i32
    return %c0_i32, %c0_i32_0 : i32, i32
  }
  func.func @transform_5(%arg0: i32) -> (i32, i32) {
    %c0_i32 = arith.constant 0 : i32
    %c0_i32_0 = arith.constant 0 : i32
    %c0_i32_1 = arith.constant 0 : i32
    return %c0_i32, %c0_i32_0 : i32, i32
  }
  func.func @transform_6(%arg0: i32) -> (i32, i32) {
    %c0_i32 = arith.constant 0 : i32
    %c0_i32_0 = arith.constant 0 : i32
    %c0_i32_1 = arith.constant 0 : i32
    return %c0_i32, %c0_i32_0 : i32, i32
  }
  func.func @transform_7(%arg0: i32) -> (i32, i32) {
    %c0_i32 = arith.constant 0 : i32
    %c0_i32_0 = arith.constant 0 : i32
    %c0_i32_1 = arith.constant 0 : i32
    return %c0_i32, %c0_i32_0 : i32, i32
  }
  func.func @transform_8(%arg0: i32) -> (i32, i32) {
    %c0_i32 = arith.constant 0 : i32
    %c0_i32_0 = arith.constant 0 : i32
    return %arg0, %c0_i32 : i32, i32
  }
}

</mosaic_0001>

<bundles_post_ra>
// kernel: tpu_custom_call.1
= control target key start
LH: loop header
LB: loop body
LE: loop exit
PB: predicated region body
PF: predicated region fallthrough
CT: control target
= control target key end

     0   :  { %s981_s27 = smov 0   ;;  %s1091_s0 = inlined_call_operand.vmem [shape: f32[64,16], index: 0, kind: input, shape index: {}]   ;;  %s1092_s1 = inlined_call_operand.vmem [shape: f32[16,32], index: 1, kind: input, shape index: {}]   ;;  %s1093_s2 = inlined_call_operand.vmem [shape: f32[1,32], index: 2, kind: input, shape index: {}]   ;;  %s1094_s3 = inlined_call_operand.vmem [shape: f32[1,32], index: 3, kind: input, shape index: {}]   ;;  %s1095_s4 = inlined_call_operand.vmem [shape: f32[32,32], index: 4, kind: input, shape index: {}]   ;;  %s1096_s5 = inlined_call_operand.vmem [shape: f32[1,32], index: 5, kind: input, shape index: {}]   ;;  %s1097_s6 = inlined_call_operand.vmem [shape: f32[32,16], index: 6, kind: input, shape index: {}]   ;;  %s1098_s7 = inlined_call_operand.vmem [shape: f32[1,16], index: 7, kind: input, shape index: {}]   ;;  %s1099_s8 = inlined_call_operand.vmem [shape: f32[64,16], index: 8, kind: output, shape index: {}]  }
   0x1 LB: > { %s797_s28 = sadd.s32 4294967295, %s934_s27   ;;  %p801_p0 = scmp.ge.s32.totalorder %s934_s27, 1  ;;  %s934_s27 = sphi %s981_s27, %s18_s27  }
   0x2   : > { %p263_p1 = scmp.lt.s32.totalorder %s934_s27, 3 }
   0x4   : > { %p264_p2 = pnand %p801_p0, %p263_p1 }
   0x5   : > { %v313_v0 = vld [vmem:[%s1092_s1] sm:$0xff] (!%p264_p2)  ;;  %v314_v1 = vld [vmem:[%s1092_s1 + $0x8] sm:$0xff] (!%p264_p2)  ;;  %s802_s11 = sshll.u32 (!%p264_p2), %s797_s28, 2  ;;  %vm322_vm0 = vcmask (!%p264_p2), 130048   ;;  %vm420_vm1 = vcmask (!%p264_p2), 261120   ;;  %v519_v42 = vld [vmem:[%s1095_s4 + $0x10] sm:$0xff] (!%p264_p2) }
   0x6   : > { %267 = sbr.rel (%p264_p2) target bundleno = 1003 (0x3eb), region = 52  ;;  %v884_v2 = vpack.c.bf16 (!%p264_p2), %v314_v1, %v313_v0  ;;  %p298_p3 = scmp.lt.s32.totalorder (!%p264_p2), %s802_s11, 7  ;;  %v806_v7 = vld [vmem:[%s1093_s2] ss:$0 sm:$0xff] (!%p264_p2)  ;;  %v518_v41 = vld [vmem:[%s1095_s4 + $0x8] sm:$0xff] (!%p264_p2)  ;;  %v520_v44 = vld [vmem:[%s1095_s4 + $0x18] sm:$0xff] (!%p264_p2) }
   0x7   : > { %v517_v40 = vld [vmem:[%s1095_s4] sm:$0xff] (!%p264_p2)  ;;  %v892_v45 = vpack.c.bf16 (!%p264_p2), %v520_v44, %v519_v42  ;;  %v630_v47 = vld [vmem:[%s1097_s6 + $0x8] sm:$0xff] (!%p264_p2) }
   0x8   : > { %885 = vmatprep.subr.bf16.mxu0 (!%p264_p2), %v884_v2  ;;  %v888_v43 = vpack.c.bf16 (!%p264_p2), %v518_v41, %v517_v40  ;;  %v629_v46 = vld [vmem:[%s1097_s6] sm:$0xff] (!%p264_p2) }
   0x9   : > { %887 = vmatpush3.bf16.msra.mxu0 (!%p264_p2), %v884_v2  ;;  %v896_v48 = vpack.c.bf16 (!%p264_p2), %v630_v47, %v629_v46 }
   0xa   : > { %889 = vmatprep.subr.bf16.mxu1 (!%p264_p2), %v888_v43 }
   0xb   : > { %891 = vmatpush3.bf16.msra.mxu1 (!%p264_p2), %v888_v43  ;;  %897 = vmatprep.subr.bf16.mxu0 (!%p264_p2), %v896_v48 }
   0xc   : > { %893 = vmatprep.subr.bf16.mxu1 (!%p264_p2), %v892_v45 }
   0xd   : > { %s1101_s11 = smov (!%p298_p3, %s802_s11), 7 }
   0xe   : > { %s803_s12 = sshll.u32 %s1101_s11, 3 }
   0xf   : > { %s301_s15 = scalar_lea.vmem %s1091_s0, %s803_s12  ;;  %895 = vmatpush3.bf16.msra.mxu1 %v892_v45  ;;  %s307_s23 = scalar_lea.vmem %s1099_s8, %s803_s12 }
  0x10   : > { %v309_v3 = vld [vmem:[%s301_s15] sm:$0xff]  ;;  %v310_v4 = vld [vmem:[%s301_s15 + $0x8] sm:$0xff]  ;;  %v311_v5 = vld [vmem:[%s301_s15 + $0x10] sm:$0xff] }
  0x11   : > { %850 = vmatprep.mubr.msk.f32.mxu0 %vm322_vm0, %v309_v3  ;;  %v312_v6 = vld [vmem:[%s301_s15 + $0x18] sm:$0xff] }
  0x12   : > { %851 = vmatmul.mubr.msk.f32.vlgmr.msra.gmra.mrb[0].mxu0 %vm322_vm0, %v310_v4 }
  0x13   : > { %853 = vmatprep.mubr.msk.f32.mxu0 %vm322_vm0, %v311_v5  ;;  %899 = vmatpush3.bf16.msra.mxu0 %v896_v48 }
  0x16   : > { %854 = vmatmul.mubr.msk.f32.gmra.mrb[2].mxu0 %vm322_vm0, %v312_v6 }
  0xe5   : > { %v852_v8 = vpop.f32.mrb[0].mxu0 }
  0xe6   : > { %v401_v9 = vpop.f32.mrb[1].mxu0  ;;  %v407_v11 = vadd.f32 %v852_v8, %v806_v7 }
  0xe7   : > { %v402_v10 = vadd.f32 %v806_v7, %v401_v9 }
  0xe8   : > { %v424_v18 = vsel %vm420_vm1, %v407_v11, 0.0 }
  0xe9   : > { %v855_v12 = vpop.f32.mrb[2].mxu0  ;;  %v421_v13 = vsel %vm420_vm1, %v402_v10, 0.0 }
  0xea   : > { %v411_v14 = vpop.f32.mrb[3].mxu0  ;;  %422 = vadd.xlane.f32.xlu0 %v421_v13  ;;  %v417_v16 = vadd.f32 %v855_v12, %v806_v7 }
  0xeb   : > { %v412_v15 = vadd.f32 %v806_v7, %v411_v14 }
  0xec   : > { %v430_v19 = vsel %vm420_vm1, %v417_v16, 0.0 }
  0xed   : > { %v427_v17 = vsel %vm420_vm1, %v412_v15, 0.0 }
  0xee   : > { %428 = vadd.xlane.f32.xlu1 %v427_v17  ;;  %425 = vadd.xlane.f32.xlu0 %v424_v18  ;;  %v811_v18 = vld [vmem:[%s1094_s3] ss:$0 sm:$0xff] }
  0xf2   : > { %431 = vadd.xlane.f32.xlu1 %v430_v19 }
 0x177   : > { %v423_v20 = vpop.xlane.xlu0 %422 }
 0x178   : > { %v434_v21 = vmul.f32 0.03125, %v423_v20 }
 0x17a   : > { %v1014_v22 = vsub.f32 %v402_v10, %v434_v21 }
 0x17b   : > { %v429_v23 = vpop.xlane.xlu1 %428  ;;  %v426_v24 = vpop.xlane.xlu0 %425 }
 0x17c   : > { %v436_v25 = vmul.f32 0.03125, %v429_v23  ;;  %v435_v26 = vmul.f32 0.03125, %v426_v24  ;;  %v442_v27 = vmul.f32 %v1014_v22, %v1014_v22 }
 0x17e   : > { %v1018_v28 = vsub.f32 %v412_v15, %v436_v25  ;;  %v1020_v29 = vsub.f32 %v407_v11, %v435_v26  ;;  %v446_v30 = vsel %vm420_vm1, %v442_v27, 0.0 }
 0x17f   : > { %v432_v31 = vpop.xlane.xlu1 %431  ;;  %447 = vadd.xlane.f32.xlu0 %v446_v30 }
 0x180   : > { %v437_v32 = vmul.f32 0.03125, %v432_v31  ;;  %v444_v33 = vmul.f32 %v1018_v28, %v1018_v28  ;;  %v443_v34 = vmul.f32 %v1020_v29, %v1020_v29 }
 0x182   : > { %v1027_v35 = vsub.f32 %v417_v16, %v437_v32  ;;  %v452_v36 = vsel %vm420_vm1, %v444_v33, 0.0  ;;  %v449_v37 = vsel %vm420_vm1, %v443_v34, 0.0 }
 0x183   : > { %453 = vadd.xlane.f32.xlu0 %v452_v36  ;;  %450 = vadd.xlane.f32.xlu1 %v449_v37 }
 0x184   : > { %v445_v38 = vmul.f32 %v1027_v35, %v1027_v35 }
 0x186   : > { %v455_v39 = vsel %vm420_vm1, %v445_v38, 0.0 }
 0x187   : > { %456 = vadd.xlane.f32.xlu1 %v455_v39 }
 0x20c   : > { %v448_v49 = vpop.xlane.xlu0 %447 }
 0x20d   : > { %v458_v50 = vmul.f32 0.032258064, %v448_v49 }
 0x20f   : > { %912 = vrsqrt.f32 %v458_v50  ;;  %vm464_vm2 = vcmp.eq.f32.partialorder %v458_v50, inf  ;;  %v467_v59 = vand.u32 2147483648, %v458_v50  ;;  %vm466_vm3 = vcmp.eq.f32.partialorder %v458_v50, 0.0 }
 0x210   : > { %v451_v51 = vpop.xlane.xlu1 %450  ;;  %v454_v52 = vpop.xlane.xlu0 %453 }
 0x211   : > { %v459_v53 = vmul.f32 0.032258064, %v451_v51  ;;  %v460_v54 = vmul.f32 0.032258064, %v454_v52 }
 0x213   : > { %914 = vrsqrt.f32 %v459_v53  ;;  %vm471_vm4 = vcmp.eq.f32.partialorder %v459_v53, inf  ;;  %vm473_vm5 = vcmp.eq.f32.partialorder %v459_v53, 0.0  ;;  %v474_v2 = vand.u32 2147483648, %v459_v53 }
 0x214   : > { %916 = vrsqrt.f32 %v460_v54  ;;  %v457_v55 = vpop.xlane.xlu1 %456  ;;  %vm478_vm6 = vcmp.eq.f32.partialorder %v460_v54, inf  ;;  %v481_v5 = vand.u32 2147483648, %v460_v54  ;;  %vm480_vm7 = vcmp.eq.f32.partialorder %v460_v54, 0.0 }
 0x215   : > { %v461_v56 = vmul.f32 0.032258064, %v457_v55 }
 0x217   : > { %918 = vrsqrt.f32 %v461_v56  ;;  %vm485_vm8 = vcmp.eq.f32.partialorder %v461_v56, inf  ;;  %v488_v13 = vand.u32 2147483648, %v461_v56  ;;  %vm487_vm9 = vcmp.eq.f32.partialorder %v461_v56, 0.0 }
 0x219   : > { %v913_v57 = vpop.eup %912 }
 0x21a   : > { %v463_v58 = vmul.f32 %v913_v57, %v458_v50 }
 0x21c   : > { %v465_v60 = vsel %vm464_vm2, %v458_v50, %v463_v58  ;;  %v817_v50 = vld [vmem:[%s1098_s7] ss:$0 sm:$0xff] }
 0x21d   : > { %v915_v61 = vpop.eup %914  ;;  %v468_v62 = vsel %vm466_vm3, %v467_v59, %v465_v60 }
 0x21e   : > { %v917_v63 = vpop.eup %916  ;;  %v470_v0 = vmul.f32 %v915_v61, %v459_v53  ;;  %v490_v1 = vadd.f32 1e-06, %v468_v62 }
 0x21f   : > { %v477_v3 = vmul.f32 %v917_v63, %v460_v54 }
 0x220   : > { %v472_v4 = vsel %vm471_vm4, %v459_v53, %v470_v0  ;;  %920 = vrcp.f32 %v490_v1 }
 0x221   : > { %v919_v6 = vpop.eup %918  ;;  %v475_v7 = vsel %vm473_vm5, %v474_v2, %v472_v4  ;;  %v479_v8 = vsel %vm478_vm6, %v460_v54, %v477_v3 }
 0x222   : > { %v491_v9 = vadd.f32 1e-06, %v475_v7  ;;  %v482_v10 = vsel %vm480_vm7, %v481_v5, %v479_v8  ;;  %v484_v11 = vmul.f32 %v919_v6, %v461_v56 }
 0x223   : > { %v492_v12 = vadd.f32 1e-06, %v482_v10 }
 0x224   : > { %v486_v14 = vsel %vm485_vm8, %v461_v56, %v484_v11  ;;  %922 = vrcp.f32 %v491_v9 }
 0x225   : > { %924 = vrcp.f32 %v492_v12  ;;  %v489_v15 = vsel %vm487_vm9, %v488_v13, %v486_v14 }
 0x226   : > { %v493_v16 = vadd.f32 1e-06, %v489_v15 }
 0x228   : > { %926 = vrcp.f32 %v493_v16 }
 0x22a   : > { %v921_v17 = vpop.eup %920 }
 0x22b   : > { %v498_v19 = vmul.f32 %v921_v17, %v1014_v22 }
 0x22d   : > { %v509_v20 = vadd.f32 %v811_v18, %v498_v19 }
 0x22e   : > { %v923_v21 = vpop.eup %922 }
 0x22f   : > { %v925_v23 = vpop.eup %924  ;;  %v513_v24 = vmax.f32 %v509_v20, 0.0  ;;  %v499_v25 = vmul.f32 %v923_v21, %v1020_v29  ;;  %v632_v29 = vld [vmem:[%s1097_s6 + $0x18] sm:$0xff] }
 0x230   : > { %v500_v26 = vmul.f32 %v925_v23, %v1018_v28  ;;  %v631_v28 = vld [vmem:[%s1097_s6 + $0x10] sm:$0xff] }
 0x231   : > { %864 = vmatprep.mubr.msk.f32.mxu1 %vm420_vm1, %v513_v24  ;;  %v510_v27 = vadd.f32 %v811_v18, %v499_v25  ;;  %v900_v37 = vpack.c.bf16 %v632_v29, %v631_v28 }
 0x232   : > { %v927_v30 = vpop.eup %926  ;;  %v511_v31 = vadd.f32 %v811_v18, %v500_v26 }
 0x233   : > { %v514_v32 = vmax.f32 %v510_v27, 0.0  ;;  %v501_v33 = vmul.f32 %v927_v30, %v1027_v35  ;;  %901 = vmatprep.subr.bf16.mxu0 %v900_v37  ;;  %v812_v35 = vld [vmem:[%s1096_s5] ss:$0 sm:$0xff] }
 0x234   : > { %v515_v34 = vmax.f32 %v511_v31, 0.0  ;;  %903 = vmatpush3.bf16.msra.mxu0 %v900_v37 }
 0x235   : > { %865 = vmatmul.mubr.msk.f32.vlgmr.msra.gmra.mrb[0].mxu1 %vm420_vm1, %v514_v32  ;;  %v512_v22 = vadd.f32 %v811_v18, %v501_v33 }
 0x236   : > { %867 = vmatprep.mubr.msk.f32.mxu1 %vm420_vm1, %v515_v34 }
 0x237   : > { %v516_v36 = vmax.f32 %v512_v22, 0.0 }
 0x239   : > { %868 = vmatmul.mubr.msk.f32.gmra.mrb[2].mxu1 %vm420_vm1, %v516_v36 }
 0x308   : > { %v866_v38 = vpop.f32.mrb[0].mxu1 }
 0x309   : > { %v612_v39 = vadd.f32 %v866_v38, %v812_v35  ;;  %v606_v40 = vpop.f32.mrb[1].mxu1 }
 0x30a   : > { %v607_v41 = vadd.f32 %v812_v35, %v606_v40 }
 0x30b   : > { %v626_v44 = vmax.f32 %v612_v39, 0.0 }
 0x30c   : > { %v625_v42 = vmax.f32 %v607_v41, 0.0  ;;  %v869_v43 = vpop.f32.mrb[2].mxu1 }
 0x30d   : > { %v622_v45 = vadd.f32 %v869_v43, %v812_v35  ;;  %v616_v46 = vpop.f32.mrb[3].mxu1 }
 0x30e   : > { %v617_v47 = vadd.f32 %v812_v35, %v616_v46  ;;  %878 = vmatprep.mubr.msk.f32.mxu0 %vm420_vm1, %v625_v42 }
 0x30f   : > { %879 = vmatmul.mubr.msk.f32.vlgmr.msra.gmra.mrb[4].mxu0 %vm420_vm1, %v626_v44  ;;  %v628_v49 = vmax.f32 %v622_v45, 0.0 }
 0x310   : > { %v627_v48 = vmax.f32 %v617_v47, 0.0 }
 0x312   : > { %881 = vmatprep.mubr.msk.f32.mxu0 %vm420_vm1, %v627_v48 }
 0x313   : > { %882 = vmatmul.mubr.msk.f32.gmra.mrb[6].mxu0 %vm420_vm1, %v628_v49 }
 0x3e2   : > { %v880_v51 = vpop.f32.mrb[4].mxu0 }
 0x3e3   : > { %v718_v52 = vpop.f32.mrb[5].mxu0  ;;  %v724_v54 = vadd.f32 %v880_v51, %v817_v50 }
 0x3e4   : > { %v719_v53 = vadd.f32 %v817_v50, %v718_v52 }
 0x3e5   : > { %738 = vst.msk [vmem:[%s307_s23 + $0x8] sm:$0xff] %vm322_vm0, %v724_v54 }
 0x3e6   : > { %737 = vst.msk [vmem:[%s307_s23] sm:$0xff] %vm322_vm0, %v719_v53  ;;  %v883_v55 = vpop.f32.mrb[6].mxu0 }
 0x3e7   : > { %v728_v56 = vpop.f32.mrb[7].mxu0  ;;  %v734_v58 = vadd.f32 %v883_v55, %v817_v50 }
 0x3e8   : > { %v729_v57 = vadd.f32 %v817_v50, %v728_v56 }
 0x3e9   : > { %740 = vst.msk [vmem:[%s307_s23 + $0x18] sm:$0xff] %vm322_vm0, %v734_v58 }
 0x3ea   : > { %739 = vst.msk [vmem:[%s307_s23 + $0x10] sm:$0xff] %vm322_vm0, %v729_v57 }
 0x3eb PF: > { %s18_s27 = sadd.s32 1, %s934_s27  }
 0x3ec   : > { %p15_p4 = scmp.ge.s32.totalorder %s18_s27, 4  }
 0x3ee   :  { %17 = sbr.rel (!%p15_p4) target bundleno = 1 (0x1), region = 82 }

// kernel: tpu_custom_call.1
= control target key start
LH: loop header
LB: loop body
LE: loop exit
PB: predicated region body
PF: predicated region fallthrough
CT: control target
= control target key end

     0   :  { %s981_s27 = smov 0   ;;  %s1091_s0 = inlined_call_operand.vmem [shape: f32[64,16], index: 0, kind: input, shape index: {}]   ;;  %s1092_s1 = inlined_call_operand.vmem [shape: f32[16,32], index: 1, kind: input, shape index: {}]   ;;  %s1093_s2 = inlined_call_operand.vmem [shape: f32[1,32], index: 2, kind: input, shape index: {}]   ;;  %s1094_s3 = inlined_call_operand.vmem [shape: f32[1,32], index: 3, kind: input, shape index: {}]   ;;  %s1095_s4 = inlined_call_operand.vmem [shape: f32[32,32], index: 4, kind: input, shape index: {}]   ;;  %s1096_s5 = inlined_call_operand.vmem [shape: f32[1,32], index: 5, kind: input, shape index: {}]   ;;  %s1097_s6 = inlined_call_operand.vmem [shape: f32[32,16], index: 6, kind: input, shape index: {}]   ;;  %s1098_s7 = inlined_call_operand.vmem [shape: f32[1,16], index: 7, kind: input, shape index: {}]   ;;  %s1099_s8 = inlined_call_operand.vmem [shape: f32[64,16], index: 8, kind: output, shape index: {}]  }
   0x1 LB: > { %s797_s28 = sadd.s32 4294967295, %s934_s27   ;;  %p801_p0 = scmp.ge.s32.totalorder %s934_s27, 1  ;;  %s934_s27 = sphi %s981_s27, %s18_s27  }
   0x2   : > { %p263_p1 = scmp.lt.s32.totalorder %s934_s27, 3 }
   0x4   : > { %p264_p2 = pnand %p801_p0, %p263_p1 }
   0x5   : > { %v313_v0 = vld [vmem:[%s1092_s1] sm:$0xff] (!%p264_p2)  ;;  %v314_v1 = vld [vmem:[%s1092_s1 + $0x8] sm:$0xff] (!%p264_p2)  ;;  %s802_s11 = sshll.u32 (!%p264_p2), %s797_s28, 2  ;;  %vm322_vm0 = vcmask (!%p264_p2), 130048   ;;  %vm420_vm1 = vcmask (!%p264_p2), 261120   ;;  %v519_v42 = vld [vmem:[%s1095_s4 + $0x10] sm:$0xff] (!%p264_p2) }
   0x6   : > { %267 = sbr.rel (%p264_p2) target bundleno = 1003 (0x3eb), region = 52  ;;  %v884_v2 = vpack.c.bf16 (!%p264_p2), %v314_v1, %v313_v0  ;;  %p298_p3 = scmp.lt.s32.totalorder (!%p264_p2), %s802_s11, 7  ;;  %v806_v7 = vld [vmem:[%s1093_s2] ss:$0 sm:$0xff] (!%p264_p2)  ;;  %v518_v41 = vld [vmem:[%s1095_s4 + $0x8] sm:$0xff] (!%p264_p2)  ;;  %v520_v44 = vld [vmem:[%s1095_s4 + $0x18] sm:$0xff] (!%p264_p2) }
   0x7   : > { %v517_v40 = vld [vmem:[%s1095_s4] sm:$0xff] (!%p264_p2)  ;;  %v892_v45 = vpack.c.bf16 (!%p264_p2), %v520_v44, %v519_v42  ;;  %v630_v47 = vld [vmem:[%s1097_s6 + $0x8] sm:$0xff] (!%p264_p2) }
   0x8   : > { %885 = vmatprep.subr.bf16.mxu0 (!%p264_p2), %v884_v2  ;;  %v888_v43 = vpack.c.bf16 (!%p264_p2), %v518_v41, %v517_v40  ;;  %v629_v46 = vld [vmem:[%s1097_s6] sm:$0xff] (!%p264_p2) }
   0x9   : > { %887 = vmatpush3.bf16.msra.mxu0 (!%p264_p2), %v884_v2  ;;  %v896_v48 = vpack.c.bf16 (!%p264_p2), %v630_v47, %v629_v46 }
   0xa   : > { %889 = vmatprep.subr.bf16.mxu1 (!%p264_p2), %v888_v43 }
   0xb   : > { %891 = vmatpush3.bf16.msra.mxu1 (!%p264_p2), %v888_v43  ;;  %897 = vmatprep.subr.bf16.mxu0 (!%p264_p2), %v896_v48 }
   0xc   : > { %893 = vmatprep.subr.bf16.mxu1 (!%p264_p2), %v892_v45 }
   0xd   : > { %s1101_s11 = smov (!%p298_p3, %s802_s11), 7 }
   0xe   : > { %s803_s12 = sshll.u32 %s1101_s11, 3 }
   0xf   : > { %s301_s15 = scalar_lea.vmem %s1091_s0, %s803_s12  ;;  %895 = vmatpush3.bf16.msra.mxu1 %v892_v45  ;;  %s307_s23 = scalar_lea.vmem %s1099_s8, %s803_s12 }
  0x10   : > { %v309_v3 = vld [vmem:[%s301_s15] sm:$0xff]  ;;  %v310_v4 = vld [vmem:[%s301_s15 + $0x8] sm:$0xff]  ;;  %v311_v5 = vld [vmem:[%s301_s15 + $0x10] sm:$0xff] }
  0x11   : > { %850 = vmatprep.mubr.msk.f32.mxu0 %vm322_vm0, %v309_v3  ;;  %v312_v6 = vld [vmem:[%s301_s15 + $0x18] sm:$0xff] }
  0x12   : > { %851 = vmatmul.mubr.msk.f32.vlgmr.msra.gmra.mrb[0].mxu0 %vm322_vm0, %v310_v4 }
  0x13   : > { %853 = vmatprep.mubr.msk.f32.mxu0 %vm322_vm0, %v311_v5  ;;  %899 = vmatpush3.bf16.msra.mxu0 %v896_v48 }
  0x16   : > { %854 = vmatmul.mubr.msk.f32.gmra.mrb[2].mxu0 %vm322_vm0, %v312_v6 }
  0xe5   : > { %v852_v8 = vpop.f32.mrb[0].mxu0 }
  0xe6   : > { %v401_v9 = vpop.f32.mrb[1].mxu0  ;;  %v407_v11 = vadd.f32 %v852_v8, %v806_v7 }
  0xe7   : > { %v402_v10 = vadd.f32 %v806_v7, %v401_v9 }
  0xe8   : > { %v424_v18 = vsel %vm420_vm1, %v407_v11, 0.0 }
  0xe9   : > { %v855_v12 = vpop.f32.mrb[2].mxu0  ;;  %v421_v13 = vsel %vm420_vm1, %v402_v10, 0.0 }
  0xea   : > { %v411_v14 = vpop.f32.mrb[3].mxu0  ;;  %422 = vadd.xlane.f32.xlu0 %v421_v13  ;;  %v417_v16 = vadd.f32 %v855_v12, %v806_v7 }
  0xeb   : > { %v412_v15 = vadd.f32 %v806_v7, %v411_v14 }
  0xec   : > { %v430_v19 = vsel %vm420_vm1, %v417_v16, 0.0 }
  0xed   : > { %v427_v17 = vsel %vm420_vm1, %v412_v15, 0.0 }
  0xee   : > { %428 = vadd.xlane.f32.xlu1 %v427_v17  ;;  %425 = vadd.xlane.f32.xlu0 %v424_v18  ;;  %v811_v18 = vld [vmem:[%s1094_s3] ss:$0 sm:$0xff] }
  0xf2   : > { %431 = vadd.xlane.f32.xlu1 %v430_v19 }
 0x177   : > { %v423_v20 = vpop.xlane.xlu0 %422 }
 0x178   : > { %v434_v21 = vmul.f32 0.03125, %v423_v20 }
 0x17a   : > { %v1014_v22 = vsub.f32 %v402_v10, %v434_v21 }
 0x17b   : > { %v429_v23 = vpop.xlane.xlu1 %428  ;;  %v426_v24 = vpop.xlane.xlu0 %425 }
 0x17c   : > { %v436_v25 = vmul.f32 0.03125, %v429_v23  ;;  %v435_v26 = vmul.f32 0.03125, %v426_v24  ;;  %v442_v27 = vmul.f32 %v1014_v22, %v1014_v22 }
 0x17e   : > { %v1018_v28 = vsub.f32 %v412_v15, %v436_v25  ;;  %v1020_v29 = vsub.f32 %v407_v11, %v435_v26  ;;  %v446_v30 = vsel %vm420_vm1, %v442_v27, 0.0 }
 0x17f   : > { %v432_v31 = vpop.xlane.xlu1 %431  ;;  %447 = vadd.xlane.f32.xlu0 %v446_v30 }
 0x180   : > { %v437_v32 = vmul.f32 0.03125, %v432_v31  ;;  %v444_v33 = vmul.f32 %v1018_v28, %v1018_v28  ;;  %v443_v34 = vmul.f32 %v1020_v29, %v1020_v29 }
 0x182   : > { %v1027_v35 = vsub.f32 %v417_v16, %v437_v32  ;;  %v452_v36 = vsel %vm420_vm1, %v444_v33, 0.0  ;;  %v449_v37 = vsel %vm420_vm1, %v443_v34, 0.0 }
 0x183   : > { %453 = vadd.xlane.f32.xlu0 %v452_v36  ;;  %450 = vadd.xlane.f32.xlu1 %v449_v37 }
 0x184   : > { %v445_v38 = vmul.f32 %v1027_v35, %v1027_v35 }
 0x186   : > { %v455_v39 = vsel %vm420_vm1, %v445_v38, 0.0 }
 0x187   : > { %456 = vadd.xlane.f32.xlu1 %v455_v39 }
 0x20c   : > { %v448_v49 = vpop.xlane.xlu0 %447 }
 0x20d   : > { %v458_v50 = vmul.f32 0.032258064, %v448_v49 }
 0x20f   : > { %912 = vrsqrt.f32 %v458_v50  ;;  %vm464_vm2 = vcmp.eq.f32.partialorder %v458_v50, inf  ;;  %v467_v59 = vand.u32 2147483648, %v458_v50  ;;  %vm466_vm3 = vcmp.eq.f32.partialorder %v458_v50, 0.0 }
 0x210   : > { %v451_v51 = vpop.xlane.xlu1 %450  ;;  %v454_v52 = vpop.xlane.xlu0 %453 }
 0x211   : > { %v459_v53 = vmul.f32 0.032258064, %v451_v51  ;;  %v460_v54 = vmul.f32 0.032258064, %v454_v52 }
 0x213   : > { %914 = vrsqrt.f32 %v459_v53  ;;  %vm471_vm4 = vcmp.eq.f32.partialorder %v459_v53, inf  ;;  %vm473_vm5 = vcmp.eq.f32.partialorder %v459_v53, 0.0  ;;  %v474_v2 = vand.u32 2147483648, %v459_v53 }
 0x214   : > { %916 = vrsqrt.f32 %v460_v54  ;;  %v457_v55 = vpop.xlane.xlu1 %456  ;;  %vm478_vm6 = vcmp.eq.f32.partialorder %v460_v54, inf  ;;  %v481_v5 = vand.u32 2147483648, %v460_v54  ;;  %vm480_vm7 = vcmp.eq.f32.partialorder %v460_v54, 0.0 }
 0x215   : > { %v461_v56 = vmul.f32 0.032258064, %v457_v55 }
 0x217   : > { %918 = vrsqrt.f32 %v461_v56  ;;  %vm485_vm8 = vcmp.eq.f32.partialorder %v461_v56, inf  ;;  %v488_v13 = vand.u32 2147483648, %v461_v56  ;;  %vm487_vm9 = vcmp.eq.f32.partialorder %v461_v56, 0.0 }
 0x219   : > { %v913_v57 = vpop.eup %912 }
 0x21a   : > { %v463_v58 = vmul.f32 %v913_v57, %v458_v50 }
 0x21c   : > { %v465_v60 = vsel %vm464_vm2, %v458_v50, %v463_v58  ;;  %v817_v50 = vld [vmem:[%s1098_s7] ss:$0 sm:$0xff] }
 0x21d   : > { %v915_v61 = vpop.eup %914  ;;  %v468_v62 = vsel %vm466_vm3, %v467_v59, %v465_v60 }
 0x21e   : > { %v917_v63 = vpop.eup %916  ;;  %v470_v0 = vmul.f32 %v915_v61, %v459_v53  ;;  %v490_v1 = vadd.f32 1e-06, %v468_v62 }
 0x21f   : > { %v477_v3 = vmul.f32 %v917_v63, %v460_v54 }
 0x220   : > { %v472_v4 = vsel %vm471_vm4, %v459_v53, %v470_v0  ;;  %920 = vrcp.f32 %v490_v1 }
 0x221   : > { %v919_v6 = vpop.eup %918  ;;  %v475_v7 = vsel %vm473_vm5, %v474_v2, %v472_v4  ;;  %v479_v8 = vsel %vm478_vm6, %v460_v54, %v477_v3 }
 0x222   : > { %v491_v9 = vadd.f32 1e-06, %v475_v7  ;;  %v482_v10 = vsel %vm480_vm7, %v481_v5, %v479_v8  ;;  %v484_v11 = vmul.f32 %v919_v6, %v461_v56 }
 0x223   : > { %v492_v12 = vadd.f32 1e-06, %v482_v10 }
 0x224   : > { %v486_v14 = vsel %vm485_vm8, %v461_v56, %v484_v11  ;;  %922 = vrcp.f32 %v491_v9 }
 0x225   : > { %924 = vrcp.f32 %v492_v12  ;;  %v489_v15 = vsel %vm487_vm9, %v488_v13, %v486_v14 }
 0x226   : > { %v493_v16 = vadd.f32 1e-06, %v489_v15 }
 0x228   : > { %926 = vrcp.f32 %v493_v16 }
 0x22a   : > { %v921_v17 = vpop.eup %920 }
 0x22b   : > { %v498_v19 = vmul.f32 %v921_v17, %v1014_v22 }
 0x22d   : > { %v509_v20 = vadd.f32 %v811_v18, %v498_v19 }
 0x22e   : > { %v923_v21 = vpop.eup %922 }
 0x22f   : > { %v925_v23 = vpop.eup %924  ;;  %v513_v24 = vmax.f32 %v509_v20, 0.0  ;;  %v499_v25 = vmul.f32 %v923_v21, %v1020_v29  ;;  %v632_v29 = vld [vmem:[%s1097_s6 + $0x18] sm:$0xff] }
 0x230   : > { %v500_v26 = vmul.f32 %v925_v23, %v1018_v28  ;;  %v631_v28 = vld [vmem:[%s1097_s6 + $0x10] sm:$0xff] }
 0x231   : > { %864 = vmatprep.mubr.msk.f32.mxu1 %vm420_vm1, %v513_v24  ;;  %v510_v27 = vadd.f32 %v811_v18, %v499_v25  ;;  %v900_v37 = vpack.c.bf16 %v632_v29, %v631_v28 }
 0x232   : > { %v927_v30 = vpop.eup %926  ;;  %v511_v31 = vadd.f32 %v811_v18, %v500_v26 }
 0x233   : > { %v514_v32 = vmax.f32 %v510_v27, 0.0  ;;  %v501_v33 = vmul.f32 %v927_v30, %v1027_v35  ;;  %901 = vmatprep.subr.bf16.mxu0 %v900_v37  ;;  %v812_v35 = vld [vmem:[%s1096_s5] ss:$0 sm:$0xff] }
 0x234   : > { %v515_v34 = vmax.f32 %v511_v31, 0.0  ;;  %903 = vmatpush3.bf16.msra.mxu0 %v900_v37 }
 0x235   : > { %865 = vmatmul.mubr.msk.f32.vlgmr.msra.gmra.mrb[0].mxu1 %vm420_vm1, %v514_v32  ;;  %v512_v22 = vadd.f32 %v811_v18, %v501_v33 }
 0x236   : > { %867 = vmatprep.mubr.msk.f32.mxu1 %vm420_vm1, %v515_v34 }
 0x237   : > { %v516_v36 = vmax.f32 %v512_v22, 0.0 }
 0x239   : > { %868 = vmatmul.mubr.msk.f32.gmra.mrb[2].mxu1 %vm420_vm1, %v516_v36 }
 0x308   : > { %v866_v38 = vpop.f32.mrb[0].mxu1 }
 0x309   : > { %v612_v39 = vadd.f32 %v866_v38, %v812_v35  ;;  %v606_v40 = vpop.f32.mrb[1].mxu1 }
 0x30a   : > { %v607_v41 = vadd.f32 %v812_v35, %v606_v40 }
 0x30b   : > { %v626_v44 = vmax.f32 %v612_v39, 0.0 }
 0x30c   : > { %v625_v42 = vmax.f32 %v607_v41, 0.0  ;;  %v869_v43 = vpop.f32.mrb[2].mxu1 }
 0x30d   : > { %v622_v45 = vadd.f32 %v869_v43, %v812_v35  ;;  %v616_v46 = vpop.f32.mrb[3].mxu1 }
 0x30e   : > { %v617_v47 = vadd.f32 %v812_v35, %v616_v46  ;;  %878 = vmatprep.mubr.msk.f32.mxu0 %vm420_vm1, %v625_v42 }
 0x30f   : > { %879 = vmatmul.mubr.msk.f32.vlgmr.msra.gmra.mrb[4].mxu0 %vm420_vm1, %v626_v44  ;;  %v628_v49 = vmax.f32 %v622_v45, 0.0 }
 0x310   : > { %v627_v48 = vmax.f32 %v617_v47, 0.0 }
 0x312   : > { %881 = vmatprep.mubr.msk.f32.mxu0 %vm420_vm1, %v627_v48 }
 0x313   : > { %882 = vmatmul.mubr.msk.f32.gmra.mrb[6].mxu0 %vm420_vm1, %v628_v49 }
 0x3e2   : > { %v880_v51 = vpop.f32.mrb[4].mxu0 }
 0x3e3   : > { %v718_v52 = vpop.f32.mrb[5].mxu0  ;;  %v724_v54 = vadd.f32 %v880_v51, %v817_v50 }
 0x3e4   : > { %v719_v53 = vadd.f32 %v817_v50, %v718_v52 }
 0x3e5   : > { %738 = vst.msk [vmem:[%s307_s23 + $0x8] sm:$0xff] %vm322_vm0, %v724_v54 }
 0x3e6   : > { %737 = vst.msk [vmem:[%s307_s23] sm:$0xff] %vm322_vm0, %v719_v53  ;;  %v883_v55 = vpop.f32.mrb[6].mxu0 }
 0x3e7   : > { %v728_v56 = vpop.f32.mrb[7].mxu0  ;;  %v734_v58 = vadd.f32 %v883_v55, %v817_v50 }
 0x3e8   : > { %v729_v57 = vadd.f32 %v817_v50, %v728_v56 }
 0x3e9   : > { %740 = vst.msk [vmem:[%s307_s23 + $0x18] sm:$0xff] %vm322_vm0, %v734_v58 }
 0x3ea   : > { %739 = vst.msk [vmem:[%s307_s23 + $0x10] sm:$0xff] %vm322_vm0, %v729_v57 }
 0x3eb PF: > { %s18_s27 = sadd.s32 1, %s934_s27  }
 0x3ec   : > { %p15_p4 = scmp.ge.s32.totalorder %s18_s27, 4  }
 0x3ee   :  { %17 = sbr.rel (!%p15_p4) target bundleno = 1 (0x1), region = 82 }

</bundles_post_ra>
